<compile_context>
chip_gen: v7x
topology: tpu7x:2x2x1
jax: 0.10.0
libtpu: 0.0.40
codegen_flags: <defaults>
</compile_context>

<pallas_src>
import functools

import jax
import jax.numpy as jnp
import numpy as np
from jax.experimental import pallas as pl
from jax.experimental.pallas import tpu as pltpu


def _round_up(a: int, m: int) -> int:
    return ((a + m - 1) // m) * m


def _pick_tile(N, in_f, adapt_in, out_f, itemsize,
               budget_bytes=8 * 1024 * 1024, cap=2048) -> int:
    """Largest multiple-of-8 row tile that fits a conservative VMEM budget."""
    # double-buffered x / adapt_x / out tiles dominate VMEM use
    bytes_per_row = 2 * itemsize * (in_f + adapt_in + out_f)
    t = min(cap, max(budget_bytes // max(bytes_per_row, 1), 8), _round_up(N, 8))
    t = max(8, (t // 8) * 8)
    return int(t)


def adaptive_linear_kernel(x_ref, ax_ref, bw_ref, bb_ref, ww_ref, wb_ref,
                           out_ref, *, out_f):
    x = x_ref[...]                      # [tile_n, in_f]
    ax = ax_ref[...]                    # [tile_n, adapt_in]

    # Fused main linear: one MXU pass over x, both modes stacked in the lane dim.
    y = jnp.dot(x, bw_ref[...], preferred_element_type=jnp.float32) + bb_ref[...]
    b0 = y[:, :out_f]                   # mode 0
    b1 = y[:, out_f:]                   # mode 1

    # Adaptation gate (Linear(adapt_in -> 1) + Tanh), kept off the MXU:
    # VPU multiply + cross-lane reduce (XLU); tanh rides the EUP slot.
    gate = jnp.tanh(
        jnp.sum(ax * ww_ref[...], axis=-1, keepdims=True) + wb_ref[0]
    )                                   # [tile_n, 1] -> broadcasts over out_f

    out_ref[...] = (b0 + b1 * gate).astype(out_ref.dtype)


@functools.partial(jax.jit, static_argnames=("tile_n",))
def adaptive_linear(x, adapt_x, B_weight, B_bias, W_weight, W_bias, *,
                    tile_n=None):
    """x: [N, in_f], adapt_x: [N, adapt_in],
    B_weight: [out_f*2, in_f], B_bias: [out_f*2],
    W_weight: [1, adapt_in], W_bias: [1]."""
    N, in_f = x.shape
    _, adapt_in = adapt_x.shape
    out2 = B_weight.shape[0]
    out_f = out2 // 2

    # Glue (hoist/donate if weights are static across calls): de-interleave the
    # (out, mode) flattening of the PyTorch .view and fuse both modes into one
    # [in_f, 2*out_f] weight so a single MXU dot covers them.
    bw_t = jnp.concatenate([B_weight[0::2, :].T, B_weight[1::2, :].T],
                           axis=1).astype(x.dtype)
    bb = jnp.concatenate([B_bias[0::2], B_bias[1::2]]
                         ).reshape(1, 2 * out_f).astype(jnp.float32)
    ww = W_weight.reshape(1, adapt_in).astype(x.dtype)     # VPU gate row vector
    wb = W_bias.reshape(1).astype(jnp.float32)             # SMEM scalar

    if tile_n is None:
        tile = _pick_tile(N, in_f, adapt_in, out_f, x.dtype.itemsize)
    else:
        tile = max(8, (min(int(tile_n), _round_up(N, 8)) // 8) * 8)
    num_tiles = pl.cdiv(N, tile)

    cost = pl.CostEstimate(
        flops=2 * N * in_f * (2 * out_f) + 2 * N * adapt_in + 3 * N * out_f,
        transcendentals=N,
        bytes_accessed=(x.size + adapt_x.size + N * out_f) * x.dtype.itemsize
        + (bw_t.size + bb.size + ww.size) * 4,
    )

    kernel = functools.partial(adaptive_linear_kernel, out_f=out_f)
    out = pl.pallas_call(
        kernel,
        out_shape=jax.ShapeDtypeStruct((N, out_f), x.dtype),
        grid_spec=pltpu.PrefetchScalarGridSpec(
            num_scalar_prefetch=0,
            grid=(num_tiles,),
            in_specs=[
                pl.BlockSpec((tile, in_f), lambda i: (i, 0)),        # x
                pl.BlockSpec((tile, adapt_in), lambda i: (i, 0)),    # adapt_x
                pl.BlockSpec((in_f, 2 * out_f), lambda i: (0, 0)),   # fused Bw^T
                pl.BlockSpec((1, 2 * out_f), lambda i: (0, 0)),      # fused Bb
                pl.BlockSpec((1, adapt_in), lambda i: (0, 0)),       # Ww row
                pl.BlockSpec(memory_space=pltpu.MemorySpace.SMEM),   # Wb scalar
            ],
            out_specs=pl.BlockSpec((tile, out_f), lambda i: (i, 0)),
        ),
        compiler_params=pltpu.CompilerParams(
            dimension_semantics=("parallel",)),
        cost_estimate=cost,
    )(x, adapt_x, bw_t, bb, ww, wb)
    return out


def reference(x, adapt_x, B_weight, B_bias, W_weight, W_bias):
    N = x.shape[0]
    out_f = B_weight.shape[0] // 2
    w_ = jnp.tanh(adapt_x @ W_weight.T + W_bias)                 # [N, 1]
    b_ = (x @ B_weight.T + B_bias).reshape(N, out_f, 2)          # [N, out_f, 2]
    return b_[:, :, 0] + b_[:, :, 1] * w_


if __name__ == "__main__":
    # Small shapes consistent with the module's forward; N deliberately not a
    # power of two so the ragged tail block is exercised.
    N, in_f, out_f, adapt_in, n_modes = 200, 32, 16, 8, 2

    key = jax.random.PRNGKey(0)
    kx, ka, kbw, kbb, kww, kwb = jax.random.split(key, 6)

    x = jax.random.normal(kx, (N, in_f), dtype=jnp.float32)
    adapt_x = jax.random.normal(ka, (N, adapt_in), dtype=jnp.float32)

    # Deterministic synthetic parameters (shapes from AdaptiveLinear.__init__).
    B_weight = jax.random.normal(kbw, (out_f * n_modes, in_f), jnp.float32) * 0.1
    B_bias = jax.random.normal(kbb, (out_f * n_modes,), jnp.float32) * 0.1
    W_weight = jax.random.normal(kww, (1, adapt_in), jnp.float32) * 0.1
    W_bias = jax.random.normal(kwb, (1,), jnp.float32) * 0.1

    ref = reference(x, adapt_x, B_weight, B_bias, W_weight, W_bias)

    # Auto-sized (large) batch tile: single grid step for this small N.
    out = adaptive_linear(x, adapt_x, B_weight, B_bias, W_weight, W_bias)
    out = jax.block_until_ready(out)
    np.testing.assert_allclose(np.asarray(out), np.asarray(ref),
                               rtol=1e-5, atol=1e-5)

    # Small explicit tile: exercises the multi-step grid with a ragged tail.
    out2 = adaptive_linear(x, adapt_x, B_weight, B_bias, W_weight, W_bias,
                           tile_n=64)
    out2 = jax.block_until_ready(out2)
    np.testing.assert_allclose(np.asarray(out2), np.asarray(ref),
                               rtol=1e-5, atol=1e-5)

    print("KERNEL_OK")
</pallas_src>

<mosaic_0001>
module attributes {stable_mosaic.version = 11 : i64} {
  func.func @adaptive_linear_kernel(%arg0: i32, %arg1: memref<200x32xf32, #tpu.memory_space<vmem>>, %arg2: memref<200x8xf32, #tpu.memory_space<vmem>>, %arg3: memref<32x32xf32, #tpu.memory_space<vmem>>, %arg4: memref<1x32xf32, #tpu.memory_space<vmem>>, %arg5: memref<1x8xf32, #tpu.memory_space<vmem>>, %arg6: memref<1xf32, #tpu.memory_space<smem>>, %arg7: memref<200x16xf32, #tpu.memory_space<vmem>>) attributes {dimension_semantics = [#tpu.dimension_semantics<parallel>], iteration_bounds = array<i64: 1>, scalar_prefetch = 0 : i64, scratch_operands = 0 : i64, tpu.core_type = #tpu.core_type<tc>, window_params = [{transform_indices = @transform_0, window_bounds = array<i64: 200, 32>}, {transform_indices = @transform_1, window_bounds = array<i64: 200, 8>}, {pipeline_mode = #tpu.pipeline_mode<synchronous>, transform_indices = @transform_2, window_bounds = array<i64: 32, 32>}, {pipeline_mode = #tpu.pipeline_mode<synchronous>, transform_indices = @transform_3, window_bounds = array<i64: 1, 32>}, {pipeline_mode = #tpu.pipeline_mode<synchronous>, transform_indices = @transform_4, window_bounds = array<i64: 1, 8>}, {transform_indices = @transform_5, window_bounds = array<i64: 1>}, {transform_indices = @transform_6, window_bounds = array<i64: 200, 16>}]} {
    %c0 = arith.constant 0 : index
    %c0_0 = arith.constant 0 : index
    %0 = vector.load %arg1[%c0, %c0_0] : memref<200x32xf32, #tpu.memory_space<vmem>>, vector<200x32xf32>
    %c0_1 = arith.constant 0 : index
    %c0_2 = arith.constant 0 : index
    %1 = vector.load %arg2[%c0_1, %c0_2] : memref<200x8xf32, #tpu.memory_space<vmem>>, vector<200x8xf32>
    %c0_3 = arith.constant 0 : index
    %c0_4 = arith.constant 0 : index
    %2 = vector.load %arg3[%c0_3, %c0_4] : memref<32x32xf32, #tpu.memory_space<vmem>>, vector<32x32xf32>
    %cst = arith.constant dense<0.000000e+00> : vector<200x32xf32>
    %3 = tpu.matmul %0, %2, %cst {dimension_numbers = #tpu.dot_dimension_numbers<[1], [0], [0], [1], [0, 0, 1, 1], [], []>} : vector<200x32xf32>, vector<32x32xf32>, vector<200x32xf32> -> vector<200x32xf32>
    %c0_5 = arith.constant 0 : index
    %c0_6 = arith.constant 0 : index
    %4 = vector.load %arg4[%c0_5, %c0_6] : memref<1x32xf32, #tpu.memory_space<vmem>>, vector<1x32xf32>
    %5 = vector.broadcast %4 : vector<1x32xf32> to vector<200x32xf32>
    %6 = arith.addf %3, %5 : vector<200x32xf32>
    %7 = vector.extract_strided_slice %6 {offsets = [0, 0], sizes = [200, 16], strides = [1, 1]} : vector<200x32xf32> to vector<200x16xf32>
    %8 = vector.extract_strided_slice %6 {offsets = [0, 16], sizes = [200, 16], strides = [1, 1]} : vector<200x32xf32> to vector<200x16xf32>
    %c0_7 = arith.constant 0 : index
    %c0_8 = arith.constant 0 : index
    %9 = vector.load %arg5[%c0_7, %c0_8] : memref<1x8xf32, #tpu.memory_space<vmem>>, vector<1x8xf32>
    %10 = vector.broadcast %9 : vector<1x8xf32> to vector<200x8xf32>
    %11 = arith.mulf %1, %10 : vector<200x8xf32>
    %cst_9 = arith.constant dense<0.000000e+00> : vector<200xf32>
    %12 = vector.multi_reduction <add>, %11, %cst_9 [1] : vector<200x8xf32> to vector<200xf32>
    %13 = vector.shape_cast %12 : vector<200xf32> to vector<200x1xf32>
    %c0_10 = arith.constant 0 : index
    %14 = memref.load %arg6[%c0_10] : memref<1xf32, #tpu.memory_space<smem>>
    %15 = vector.broadcast %14 : f32 to vector<200x1xf32>
    %16 = arith.addf %13, %15 : vector<200x1xf32>
    %17 = math.tanh %16 : vector<200x1xf32>
    %18 = vector.broadcast %17 : vector<200x1xf32> to vector<200x16xf32>
    %19 = arith.mulf %8, %18 : vector<200x16xf32>
    %20 = arith.addf %7, %19 : vector<200x16xf32>
    %c0_11 = arith.constant 0 : index
    %c0_12 = arith.constant 0 : index
    %21 = vector.load %arg7[%c0_11, %c0_12] : memref<200x16xf32, #tpu.memory_space<vmem>>, vector<200x16xf32>
    tpu.vector_store %arg7[%c0_11, %c0_12], %20 {strides = array<i32>} : memref<200x16xf32, #tpu.memory_space<vmem>>, vector<200x16xf32>,
    return
  }
  func.func @transform_0(%arg0: i32) -> (i32, i32) {
    %c0_i32 = arith.constant 0 : i32
    %c0_i32_0 = arith.constant 0 : i32
    return %arg0, %c0_i32 : i32, i32
  }
  func.func @transform_1(%arg0: i32) -> (i32, i32) {
    %c0_i32 = arith.constant 0 : i32
    %c0_i32_0 = arith.constant 0 : i32
    return %arg0, %c0_i32 : i32, i32
  }
  func.func @transform_2(%arg0: i32) -> (i32, i32) {
    %c0_i32 = arith.constant 0 : i32
    %c0_i32_0 = arith.constant 0 : i32
    %c0_i32_1 = arith.constant 0 : i32
    return %c0_i32, %c0_i32_0 : i32, i32
  }
  func.func @transform_3(%arg0: i32) -> (i32, i32) {
    %c0_i32 = arith.constant 0 : i32
    %c0_i32_0 = arith.constant 0 : i32
    %c0_i32_1 = arith.constant 0 : i32
    return %c0_i32, %c0_i32_0 : i32, i32
  }
  func.func @transform_4(%arg0: i32) -> (i32, i32) {
    %c0_i32 = arith.constant 0 : i32
    %c0_i32_0 = arith.constant 0 : i32
    %c0_i32_1 = arith.constant 0 : i32
    return %c0_i32, %c0_i32_0 : i32, i32
  }
  func.func @transform_5(%arg0: i32) -> i32 {
    %c0_i32 = arith.constant 0 : i32
    %c0_i32_0 = arith.constant 0 : i32
    return %c0_i32 : i32
  }
  func.func @transform_6(%arg0: i32) -> (i32, i32) {
    %c0_i32 = arith.constant 0 : i32
    %c0_i32_0 = arith.constant 0 : i32
    return %arg0, %c0_i32 : i32, i32
  }
}

</mosaic_0001>

<bundles_post_ra>
// kernel: adaptive_linear.1
= control target key start
LH: loop header
LB: loop body
LE: loop exit
PB: predicated region body
PF: predicated region fallthrough
CT: control target
= control target key end

     0   :  { %v894_v0 = vmov 0.0|0.0   ;;  %vm895_vm0 = vmmov 0   ;;  %v896_v6 = vmov 0.0   ;;  %vm85_vm1 = vcmask 261120   ;;  %s1531_s2 = inlined_call_operand.vmem [shape: f32[32,32], index: 2, kind: input, shape index: {}]   ;;  %s1532_s0 = inlined_call_operand.vmem [shape: f32[200,32], index: 0, kind: input, shape index: {}]   ;;  %s1533_s1 = inlined_call_operand.vmem [shape: f32[200,8], index: 1, kind: input, shape index: {}]   ;;  %s1534_s4 = inlined_call_operand.vmem [shape: f32[1,8], index: 4, kind: input, shape index: {}]   ;;  %s1535_s5 = inlined_call_operand.<no memory space> [shape: f32[1], index: 5, kind: input, shape index: {}]   ;;  %s1536_s3 = inlined_call_operand.vmem [shape: f32[1,32], index: 3, kind: input, shape index: {}]   ;;  %s1537_s6 = inlined_call_operand.vmem [shape: f32[200,16], index: 6, kind: output, shape index: {}]  }
   0x1   :  { %830 = vmatprep.subr.bf16.mxu0 %v894_v0  ;;  %836 = vmatprep.subr.bf16.mxu1 %v894_v0  ;;  %v74_v1 = vld [vmem:[%s1531_s2] sm:$0xff]  ;;  %v75_v2 = vld [vmem:[%s1531_s2 + $0x8] sm:$0xff]  ;;  %v76_v3 = vld [vmem:[%s1531_s2 + $0x10] sm:$0xff]  ;;  %vm383_vm2 = vcmask 64512   ;;  %vm661_vm3 = vcmask 130048  }
   0x2   :  { %v831_v4 = vpack.c.bf16 %v75_v2, %v74_v1  ;;  %v77_v5 = vld [vmem:[%s1531_s2 + $0x18] sm:$0xff]  ;;  %755 = vmatprep.mubr.msk.f32.mxu0 %vm895_vm0, %v896_v6  ;;  %794 = vmatprep.mubr.msk.f32.mxu1 %vm895_vm0, %v896_v6  ;;  %v24_v8 = vld [vmem:[%s1532_s0] sm:$0xff]  ;;  %v37_v9 = vld [vmem:[%s1532_s0 + $0x68] sm:$0xff] }
   0x3   :  { %v834_v7 = vpack.c.bf16 %v77_v5, %v76_v3  ;;  %v51_v10 = vld [vmem:[%s1533_s1 + $0x10] sm:$0xff]  ;;  %v961_v11 = vld [vmem:[%s1534_s4] ss:$0 sm:$0xff]  ;;  %v52_v14 = vld [vmem:[%s1533_s1 + $0x18] sm:$0xff] }
   0x4   :  { %832 = vmatpush3.bf16.msra.mxu0 %v831_v4  ;;  %838 = vmatpush3.bf16.msra.mxu1 %v831_v4  ;;  %v360_v12 = vmul.f32 %v961_v11, %v51_v10  ;;  %v49_v13 = vld [vmem:[%s1533_s1] sm:$0xff]  ;;  %v361_v16 = vmul.f32 %v961_v11, %v52_v14  ;;  %v50_v17 = vld [vmem:[%s1533_s1 + $0x8] sm:$0xff]  ;;  %v38_v23 = vld [vmem:[%s1532_s0 + $0x70] sm:$0xff] }
   0x5   :  { %833 = vmatprep.subr.bf16.mxu0 %v894_v0  ;;  %837 = vmatprep.subr.bf16.mxu1 %v894_v0  ;;  %v358_v15 = vmul.f32 %v961_v11, %v49_v13  ;;  %v359_v19 = vmul.f32 %v961_v11, %v50_v17  ;;  %v54_v20 = vld [vmem:[%s1533_s1 + $0x28] sm:$0xff]  ;;  %v53_v21 = vld [vmem:[%s1533_s1 + $0x20] sm:$0xff]  ;;  %v56_v29 = vld [vmem:[%s1533_s1 + $0x38] sm:$0xff] }
   0x6   :  { %v390_v18 = vsel %vm383_vm2, %v360_v12, 0.0  ;;  %v25_v22 = vld [vmem:[%s1532_s0 + $0x8] sm:$0xff]  ;;  %v393_v25 = vsel %vm383_vm2, %v361_v16, 0.0  ;;  %v363_v27 = vmul.f32 %v961_v11, %v54_v20  ;;  %v362_v28 = vmul.f32 %v961_v11, %v53_v21  ;;  %v55_v30 = vld [vmem:[%s1533_s1 + $0x30] sm:$0xff]  ;;  %v39_v32 = vld [vmem:[%s1532_s0 + $0x78] sm:$0xff] }
   0x7   :  { %v384_v24 = vsel %vm383_vm2, %v358_v15, 0.0  ;;  %391 = vadd.xlane.f32.xlu1 %v390_v18  ;;  %v387_v26 = vsel %vm383_vm2, %v359_v19, 0.0  ;;  %v26_v31 = vld [vmem:[%s1532_s0 + $0x10] sm:$0xff]  ;;  %v365_v35 = vmul.f32 %v961_v11, %v56_v29  ;;  %v364_v36 = vmul.f32 %v961_v11, %v55_v30  ;;  %v58_v37 = vld [vmem:[%s1533_s1 + $0x48] sm:$0xff]  ;;  %v57_v38 = vld [vmem:[%s1533_s1 + $0x40] sm:$0xff] }
   0x8   :  { %835 = vmatpush3.bf16.msra.mxu0 %v834_v7  ;;  %839 = vmatpush3.bf16.msra.mxu1 %v834_v7  ;;  %v399_v33 = vsel %vm383_vm2, %v363_v27, 0.0  ;;  %v396_v34 = vsel %vm383_vm2, %v362_v28, 0.0  ;;  %v27_v39 = vld [vmem:[%s1532_s0 + $0x18] sm:$0xff]  ;;  %v40_v40 = vld [vmem:[%s1532_s0 + $0x80] sm:$0xff]  ;;  %v367_v43 = vmul.f32 %v961_v11, %v58_v37  ;;  %v366_v44 = vmul.f32 %v961_v11, %v57_v38  ;;  %v59_v46 = vld [vmem:[%s1533_s1 + $0x50] sm:$0xff] }
   0x9   :  { %385 = vadd.xlane.f32.xlu0 %v384_v24  ;;  %v405_v41 = vsel %vm383_vm2, %v365_v35, 0.0  ;;  %v402_v42 = vsel %vm383_vm2, %v364_v36, 0.0  ;;  %v60_v45 = vld [vmem:[%s1533_s1 + $0x58] sm:$0xff]  ;;  %v28_v47 = vld [vmem:[%s1532_s0 + $0x20] sm:$0xff]  ;;  %v41_v48 = vld [vmem:[%s1532_s0 + $0x88] sm:$0xff]  ;;  %v368_v52 = vmul.f32 %v961_v11, %v59_v46 }
   0xa   :  { %v411_v49 = vsel %vm383_vm2, %v367_v43, 0.0  ;;  %v408_v50 = vsel %vm383_vm2, %v366_v44, 0.0  ;;  %v369_v51 = vmul.f32 %v961_v11, %v60_v45  ;;  %v62_v53 = vld [vmem:[%s1533_s1 + $0x68] sm:$0xff]  ;;  %v61_v54 = vld [vmem:[%s1533_s1 + $0x60] sm:$0xff]  ;;  %v42_v56 = vld [vmem:[%s1532_s0 + $0x90] sm:$0xff] }
   0xb   :  { %756 = vmatmul.mubr.msk.f32.vlgmr.msra.gmra.mrb[0].mxu0 %vm85_vm1, %v24_v8  ;;  %795 = vmatmul.mubr.msk.f32.vlgmr.msra.gmra.mrb[0].mxu1 %vm85_vm1, %v37_v9  ;;  %v29_v55 = vld [vmem:[%s1532_s0 + $0x28] sm:$0xff]  ;;  %v414_v58 = vsel %vm383_vm2, %v368_v52, 0.0  ;;  %v371_v59 = vmul.f32 %v961_v11, %v62_v53  ;;  %v370_v60 = vmul.f32 %v961_v11, %v61_v54  ;;  %v63_v61 = vld [vmem:[%s1533_s1 + $0x70] sm:$0xff]  ;;  %v64_v62 = vld [vmem:[%s1533_s1 + $0x78] sm:$0xff] }
   0xc   :  { %758 = vmatprep.mubr.msk.f32.mxu0 %vm895_vm0, %v896_v6  ;;  %797 = vmatprep.mubr.msk.f32.mxu1 %vm895_vm0, %v896_v6  ;;  %v417_v57 = vsel %vm383_vm2, %v369_v51, 0.0  ;;  %v30_v63 = vld [vmem:[%s1532_s0 + $0x30] sm:$0xff]  ;;  %v43_v0 = vld [vmem:[%s1532_s0 + $0x98] sm:$0xff]  ;;  %v372_v3 = vmul.f32 %v961_v11, %v63_v61  ;;  %v373_v4 = vmul.f32 %v961_v11, %v64_v62  ;;  %v66_v5 = vld [vmem:[%s1533_s1 + $0x88] sm:$0xff] }
   0xd   :  { %394 = vadd.xlane.f32.xlu1 %v393_v25  ;;  %388 = vadd.xlane.f32.xlu0 %v387_v26  ;;  %v423_v1 = vsel %vm383_vm2, %v371_v59, 0.0  ;;  %v420_v2 = vsel %vm383_vm2, %v370_v60, 0.0  ;;  %v65_v7 = vld [vmem:[%s1533_s1 + $0x80] sm:$0xff]  ;;  %v31_v8 = vld [vmem:[%s1532_s0 + $0x38] sm:$0xff]  ;;  %v375_v13 = vmul.f32 %v961_v11, %v66_v5  ;;  %v67_v16 = vld [vmem:[%s1533_s1 + $0x90] sm:$0xff]  ;;  %v1242_v59 = vstv %s1535_s5 }
   0xe   :  { %v44_v9 = vld [vmem:[%s1532_s0 + $0xa0] sm:$0xff]  ;;  %v426_v10 = vsel %vm383_vm2, %v372_v3, 0.0  ;;  %v429_v12 = vsel %vm383_vm2, %v373_v4, 0.0  ;;  %v374_v14 = vmul.f32 %v961_v11, %v65_v7  ;;  %v68_v15 = vld [vmem:[%s1533_s1 + $0x98] sm:$0xff]  ;;  %v45_v18 = vld [vmem:[%s1532_s0 + $0xa8] sm:$0xff] }
   0xf   :  { %759 = vmatmul.mubr.msk.f32.gmra.mrb[2].mxu0 %vm85_vm1, %v25_v22  ;;  %798 = vmatmul.mubr.msk.f32.gmra.mrb[2].mxu1 %vm85_vm1, %v38_v23  ;;  %v32_v17 = vld [vmem:[%s1532_s0 + $0x40] sm:$0xff]  ;;  %v435_v19 = vsel %vm383_vm2, %v375_v13, 0.0  ;;  %v377_v21 = vmul.f32 %v961_v11, %v68_v15  ;;  %v376_v22 = vmul.f32 %v961_v11, %v67_v16  ;;  %v70_v23 = vld [vmem:[%s1533_s1 + $0xa8] sm:$0xff]  ;;  %v46_v26 = vld [vmem:[%s1532_s0 + $0xb0] sm:$0xff] }
  0x10   :  { %761 = vmatprep.mubr.msk.f32.mxu0 %vm895_vm0, %v896_v6  ;;  %800 = vmatprep.mubr.msk.f32.mxu1 %vm895_vm0, %v896_v6  ;;  %v432_v20 = vsel %vm383_vm2, %v374_v14, 0.0  ;;  %v69_v24 = vld [vmem:[%s1533_s1 + $0xa0] sm:$0xff]  ;;  %v33_v25 = vld [vmem:[%s1532_s0 + $0x48] sm:$0xff]  ;;  %v379_v29 = vmul.f32 %v961_v11, %v70_v23 }
  0x11   :  { %400 = vadd.xlane.f32.xlu1 %v399_v33  ;;  %397 = vadd.xlane.f32.xlu0 %v396_v34  ;;  %v441_v27 = vsel %vm383_vm2, %v377_v21, 0.0  ;;  %v438_v28 = vsel %vm383_vm2, %v376_v22, 0.0  ;;  %v378_v30 = vmul.f32 %v961_v11, %v69_v24  ;;  %v34_v33 = vld [vmem:[%s1532_s0 + $0x50] sm:$0xff]  ;;  %v47_v34 = vld [vmem:[%s1532_s0 + $0xb8] sm:$0xff]  ;;  %v36_v45 = vld [vmem:[%s1532_s0 + $0x60] sm:$0xff] }
  0x12   :  { %v447_v35 = vsel %vm383_vm2, %v379_v29, 0.0  ;;  %v1253_v5 = vld [vmem:[%s1536_s3] ss:$0 sm:$0xff]  ;;  %s897_s3 = smov 112  }
  0x13   :  { %762 = vmatmul.mubr.msk.f32.gmra.mrb[4].mxu0 %vm85_vm1, %v26_v31  ;;  %801 = vmatmul.mubr.msk.f32.gmra.mrb[4].mxu1 %vm85_vm1, %v39_v32  ;;  %v71_v31 = vld [vmem:[%s1533_s1 + $0xb0] sm:$0xff]  ;;  %v72_v32 = vld [vmem:[%s1533_s1 + $0xb8] sm:$0xff]  ;;  %v444_v36 = vsel %vm383_vm2, %v378_v30, 0.0 }
  0x14   :  { %764 = vmatprep.mubr.msk.f32.mxu0 %vm895_vm0, %v896_v6  ;;  %803 = vmatprep.mubr.msk.f32.mxu1 %vm895_vm0, %v896_v6  ;;  %v380_v37 = vmul.f32 %v961_v11, %v71_v31  ;;  %v381_v38 = vmul.f32 %v961_v11, %v72_v32 }
  0x15   :  { %406 = vadd.xlane.f32.xlu1 %v405_v41  ;;  %403 = vadd.xlane.f32.xlu0 %v402_v42  ;;  %v48_v41 = vld [vmem:[%s1532_s0 + $0xc0] sm:$0xff] }
  0x16   :  { %v450_v42 = vsel %vm383_vm2, %v380_v37, 0.0  ;;  %v453_v43 = vsel %vm383_vm2, %v381_v38, 0.0 }
  0x17   :  { %765 = vmatmul.mubr.msk.f32.gmra.mrb[6].mxu0 %vm85_vm1, %v27_v39  ;;  %804 = vmatmul.mubr.msk.f32.gmra.mrb[6].mxu1 %vm85_vm1, %v40_v40  ;;  %v73_v39 = vld [vmem:[%s1533_s1 + $0xc0] sm:$0xff]  ;;  %v35_v40 = vld [vmem:[%s1532_s0 + $0x58] sm:$0xff] }
  0x18   :  { %767 = vmatprep.mubr.msk.f32.mxu0 %vm895_vm0, %v896_v6  ;;  %806 = vmatprep.mubr.msk.f32.mxu1 %vm895_vm0, %v896_v6  ;;  %v382_v44 = vmul.f32 %v961_v11, %v73_v39 }
  0x19   :  { %412 = vadd.xlane.f32.xlu1 %v411_v49  ;;  %409 = vadd.xlane.f32.xlu0 %v408_v50 }
  0x1a   :  { %v456_v46 = vsel %vm383_vm2, %v382_v44, 0.0 }
  0x1b   :  { %768 = vmatmul.mubr.msk.f32.gmra.mrb[8].mxu0 %vm85_vm1, %v28_v47  ;;  %807 = vmatmul.mubr.msk.f32.gmra.mrb[8].mxu1 %vm85_vm1, %v41_v48 }
  0x1c   :  { %770 = vmatprep.mubr.msk.f32.mxu0 %vm895_vm0, %v896_v6  ;;  %809 = vmatprep.mubr.msk.f32.mxu1 %vm895_vm0, %v896_v6 }
  0x1d   :  { %418 = vadd.xlane.f32.xlu1 %v417_v57  ;;  %415 = vadd.xlane.f32.xlu0 %v414_v58 }
  0x1f   :  { %771 = vmatmul.mubr.msk.f32.gmra.mrb[10].mxu0 %vm85_vm1, %v29_v55  ;;  %810 = vmatmul.mubr.msk.f32.gmra.mrb[10].mxu1 %vm85_vm1, %v42_v56 }
  0x20   :  { %773 = vmatprep.mubr.msk.f32.mxu0 %vm895_vm0, %v896_v6  ;;  %812 = vmatprep.mubr.msk.f32.mxu1 %vm895_vm0, %v896_v6 }
  0x21   :  { %424 = vadd.xlane.f32.xlu1 %v423_v1  ;;  %421 = vadd.xlane.f32.xlu0 %v420_v2 }
  0x23   :  { %774 = vmatmul.mubr.msk.f32.gmra.mrb[12].mxu0 %vm85_vm1, %v30_v63  ;;  %813 = vmatmul.mubr.msk.f32.gmra.mrb[12].mxu1 %vm85_vm1, %v43_v0 }
  0x24   :  { %776 = vmatprep.mubr.msk.f32.mxu0 %vm895_vm0, %v896_v6  ;;  %815 = vmatprep.mubr.msk.f32.mxu1 %vm895_vm0, %v896_v6 }
  0x25   :  { %427 = vadd.xlane.f32.xlu0 %v426_v10  ;;  %430 = vadd.xlane.f32.xlu1 %v429_v12 }
  0x27   :  { %777 = vmatmul.mubr.msk.f32.gmra.mrb[14].mxu0 %vm85_vm1, %v31_v8  ;;  %816 = vmatmul.mubr.msk.f32.gmra.mrb[14].mxu1 %vm85_vm1, %v44_v9 }
  0x28   :  { %779 = vmatprep.mubr.msk.f32.mxu0 %vm895_vm0, %v896_v6  ;;  %818 = vmatprep.mubr.msk.f32.mxu1 %vm895_vm0, %v896_v6 }
  0x29   :  { %436 = vadd.xlane.f32.xlu1 %v435_v19  ;;  %433 = vadd.xlane.f32.xlu0 %v432_v20 }
  0x2b   :  { %780 = vmatmul.mubr.msk.f32.gmra.mrb[16].mxu0 %vm85_vm1, %v32_v17  ;;  %819 = vmatmul.mubr.msk.f32.gmra.mrb[16].mxu1 %vm85_vm1, %v45_v18 }
  0x2c   :  { %782 = vmatprep.mubr.msk.f32.mxu0 %vm895_vm0, %v896_v6  ;;  %821 = vmatprep.mubr.msk.f32.mxu1 %vm895_vm0, %v896_v6 }
  0x2d   :  { %442 = vadd.xlane.f32.xlu1 %v441_v27  ;;  %439 = vadd.xlane.f32.xlu0 %v438_v28 }
  0x2f   :  { %783 = vmatmul.mubr.msk.f32.gmra.mrb[18].mxu0 %vm85_vm1, %v33_v25  ;;  %822 = vmatmul.mubr.msk.f32.gmra.mrb[18].mxu1 %vm85_vm1, %v46_v26 }
  0x30   :  { %785 = vmatprep.mubr.msk.f32.mxu0 %vm895_vm0, %v896_v6  ;;  %824 = vmatprep.mubr.msk.f32.mxu1 %vm895_vm0, %v896_v6 }
  0x31   :  { %448 = vadd.xlane.f32.xlu1 %v447_v35  ;;  %445 = vadd.xlane.f32.xlu0 %v444_v36 }
  0x33   :  { %786 = vmatmul.mubr.msk.f32.gmra.mrb[20].mxu0 %vm85_vm1, %v34_v33  ;;  %825 = vmatmul.mubr.msk.f32.gmra.mrb[20].mxu1 %vm85_vm1, %v47_v34 }
  0x34   :  { %788 = vmatprep.mubr.msk.f32.mxu0 %vm895_vm0, %v896_v6  ;;  %827 = vmatprep.mubr.msk.f32.mxu1 %vm895_vm0, %v896_v6 }
  0x35   :  { %451 = vadd.xlane.f32.xlu0 %v450_v42  ;;  %454 = vadd.xlane.f32.xlu1 %v453_v43 }
  0x37   :  { %789 = vmatmul.mubr.msk.f32.gmra.mrb[22].mxu0 %vm85_vm1, %v35_v40  ;;  %828 = vmatmul.mubr.msk.f32.gmra.mrb[22].mxu1 %vm85_vm1, %v48_v41 }
  0x38   :  { %791 = vmatprep.mubr.msk.f32.mxu0 %vm895_vm0, %v896_v6 }
  0x39   :  { %457 = vadd.xlane.f32.xlu0 %v456_v46 }
  0x3b   :  { %792 = vmatmul.mubr.msk.f32.gmra.mrb[24].mxu0 %vm85_vm1, %v36_v45 }
  0x94   :  { %v392_v11 = vpop.xlane.xlu1 %391 }
  0x95   :  { %v463_v3 = vadd.f32 %v1242_v59, %v392_v11 }
  0x96   :  { %v386_v47 = vpop.xlane.xlu0 %385 }
  0x97   :  { %v461_v62 = vadd.f32 %v1242_v59, %v386_v47 }
  0x9a   :  { %v389_v48 = vpop.xlane.xlu0 %388  ;;  %v395_v49 = vpop.xlane.xlu1 %394 }
  0x9b   :  { %v462_v1 = vadd.f32 %v1242_v59, %v389_v48  ;;  %v464_v7 = vadd.f32 %v1242_v59, %v395_v49 }
  0x9e   :  { %v398_v50 = vpop.xlane.xlu0 %397  ;;  %v401_v51 = vpop.xlane.xlu1 %400 }
  0x9f   :  { %v466_v31 = vadd.f32 %v1242_v59, %v401_v51  ;;  %v465_v32 = vadd.f32 %v1242_v59, %v398_v50 }
  0xa2   :  { %v1225_v52 = vpop.xlane.xlu0 %403  ;;  %v1227_v6 = vpop.xlane.xlu1 %406 }
  0xa6   :  { %v1229_v53 = vpop.xlane.xlu0 %409  ;;  %v1231_v54 = vpop.xlane.xlu1 %412 }
  0xaa   :  { %v1233_v55 = vpop.xlane.xlu0 %415  ;;  %v1235_v56 = vpop.xlane.xlu1 %418 }
  0xae   :  { %v1237_v57 = vpop.xlane.xlu0 %421  ;;  %v425_v58 = vpop.xlane.xlu1 %424 }
  0xaf   :  { %v474_v60 = vadd.f32 %v1242_v59, %v425_v58 }
  0xb1   :  { %844 = vtanh.f32 %v474_v60 }
  0xb2   :  { %v428_v61 = vpop.xlane.xlu0 %427  ;;  %v431_v0 = vpop.xlane.xlu1 %430  ;;  %846 = vtanh.f32 %v461_v62 }
  0xb3   :  { %v475_v63 = vadd.f32 %v1242_v59, %v428_v61  ;;  %v476_v2 = vadd.f32 %v1242_v59, %v431_v0  ;;  %v467_v0 = vadd.f32 %v1242_v59, %v1225_v52 }
  0xb5   :  { %848 = vtanh.f32 %v475_v63  ;;  %v468_v63 = vadd.f32 %v1242_v59, %v1227_v6 }
  0xb6   :  { %850 = vtanh.f32 %v462_v1  ;;  %v434_v4 = vpop.xlane.xlu0 %433  ;;  %v437_v8 = vpop.xlane.xlu1 %436 }
  0xb7   :  { %852 = vtanh.f32 %v476_v2  ;;  %v477_v13 = vadd.f32 %v1242_v59, %v434_v4  ;;  %v478_v19 = vadd.f32 %v1242_v59, %v437_v8 }
  0xb8   :  { %854 = vtanh.f32 %v463_v3 }
  0xb9   :  { %856 = vtanh.f32 %v464_v7 }
  0xba   :  { %v440_v22 = vpop.xlane.xlu0 %439  ;;  %858 = vtanh.f32 %v477_v13  ;;  %v443_v35 = vpop.xlane.xlu1 %442 }
  0xbb   :  { %v845_v9 = vpop.eup %844  ;;  %860 = vtanh.f32 %v478_v19  ;;  %v479_v39 = vadd.f32 %v1242_v59, %v440_v22  ;;  %v480_v45 = vadd.f32 %v1242_v59, %v443_v35 }
  0xbc   :  { %v847_v18 = vpop.eup %846  ;;  %862 = vtanh.f32 %v466_v31 }
  0xbd   :  { %864 = vtanh.f32 %v465_v32 }
  0xbe   :  { %v446_v11 = vpop.xlane.xlu0 %445  ;;  %866 = vtanh.f32 %v479_v39  ;;  %v449_v2 = vpop.xlane.xlu1 %448 }
  0xbf   :  { %v849_v23 = vpop.eup %848  ;;  %868 = vtanh.f32 %v480_v45  ;;  %v481_v8 = vadd.f32 %v1242_v59, %v446_v11  ;;  %v482_v52 = vadd.f32 %v1242_v59, %v449_v2 }
  0xc0   :  { %v851_v30 = vpop.eup %850  ;;  %870 = vtanh.f32 %v468_v63 }
  0xc1   :  { %v853_v36 = vpop.eup %852  ;;  %872 = vtanh.f32 %v467_v0 }
  0xc2   :  { %v855_v44 = vpop.eup %854  ;;  %874 = vtanh.f32 %v481_v8 }
  0xc3   :  { %v857_v50 = vpop.eup %856  ;;  %876 = vtanh.f32 %v482_v52 }
  0xc4   :  { %v859_v62 = vpop.eup %858 }
  0xc5   :  { %v861_v3 = vpop.eup %860 }
  0xde   :  { %v227_v10 = vpop.f32.mrb[0].mxu0  ;;  %v292_v12 = vpop.f32.mrb[0].mxu1 }
  0xdf   :  { %v1258_v14 = vadd.f32 %v1253_v5, %v227_v10  ;;  %v1261_v15 = vadd.f32 %v1253_v5, %v292_v12  ;;  %v757_v16 = vpop.f32.mrb[1].mxu0  ;;  %v796_v17 = vpop.f32.mrb[1].mxu1 }
  0xe0   :  { %v452_v17 = vpop.xlane.xlu0 %451 }
  0xe1   :  { %v511_v20 = vmul.f32 %v847_v18, %v1258_v14  ;;  %v524_v21 = vmul.f32 %v845_v9, %v1261_v15  ;;  %v863_v18 = vpop.eup %862 }
  0xe2   :  { %v232_v24 = vpop.f32.mrb[2].mxu0  ;;  %v297_v25 = vpop.f32.mrb[2].mxu1 }
  0xe3   :  { %v1267_v26 = vadd.f32 %v1253_v5, %v232_v24  ;;  %v1270_v27 = vadd.f32 %v1253_v5, %v297_v25  ;;  %587 = vrot.lane.b32.xlu0 %v524_v21, %s897_s3  ;;  %v799_v28 = vpop.f32.mrb[3].mxu1  ;;  %561 = vrot.lane.b32.xlu1 %v511_v20, %s897_s3  ;;  %v760_v29 = vpop.f32.mrb[3].mxu0 }
  0xe4   :  { %v865_v21 = vpop.eup %864  ;;  %v470_v29 = vadd.f32 %v1242_v59, %v1231_v54 }
  0xe5   :  { %v512_v33 = vmul.f32 %v851_v30, %v1267_v26  ;;  %v525_v34 = vmul.f32 %v849_v23, %v1270_v27  ;;  %v867_v28 = vpop.eup %866  ;;  %v469_v30 = vadd.f32 %v1242_v59, %v1229_v53 }
  0xe6   :  { %v237_v37 = vpop.f32.mrb[4].mxu0  ;;  %v302_v38 = vpop.f32.mrb[4].mxu1  ;;  %878 = vtanh.f32 %v470_v29 }
  0xe7   :  { %v1280_v40 = vadd.f32 %v1253_v5, %v237_v37  ;;  %v1283_v41 = vadd.f32 %v1253_v5, %v302_v38  ;;  %589 = vrot.lane.b32.xlu1 %v525_v34, %s897_s3  ;;  %563 = vrot.lane.b32.xlu0 %v512_v33, %s897_s3  ;;  %v763_v42 = vpop.f32.mrb[5].mxu0  ;;  %v802_v43 = vpop.f32.mrb[5].mxu1  ;;  %880 = vtanh.f32 %v469_v30 }
  0xe8   :  { %v869_v33 = vpop.eup %868  ;;  %v455_v43 = vpop.xlane.xlu1 %454 }
  0xe9   :  { %v513_v46 = vmul.f32 %v855_v44, %v1280_v40  ;;  %v526_v47 = vmul.f32 %v853_v36, %v1283_v41  ;;  %v483_v36 = vadd.f32 %v1242_v59, %v452_v17  ;;  %v871_v44 = vpop.eup %870 }
  0xea   :  { %v242_v48 = vpop.f32.mrb[6].mxu0  ;;  %v307_v49 = vpop.f32.mrb[6].mxu1 }
  0xeb   :  { %v1291_v51 = vadd.f32 %v1253_v5, %v242_v48  ;;  %591 = vrot.lane.b32.xlu0 %v526_v47, %s897_s3  ;;  %565 = vrot.lane.b32.xlu1 %v513_v46, %s897_s3  ;;  %v766_v58 = vpop.f32.mrb[7].mxu0  ;;  %v1296_v60 = vadd.f32 %v1253_v5, %v307_v49  ;;  %v805_v61 = vpop.f32.mrb[7].mxu1  ;;  %882 = vtanh.f32 %v483_v36 }
  0xec   :  { %v873_v47 = vpop.eup %872  ;;  %v472_v61 = vadd.f32 %v1242_v59, %v1235_v56 }
  0xed   :  { %v514_v1 = vmul.f32 %v857_v50, %v1291_v51  ;;  %v527_v9 = vmul.f32 %v859_v62, %v1296_v60  ;;  %v875_v58 = vpop.eup %874  ;;  %v471_v62 = vadd.f32 %v1242_v59, %v1233_v55 }
  0xee   :  { %v247_v4 = vpop.f32.mrb[8].mxu0  ;;  %v312_v7 = vpop.f32.mrb[8].mxu1  ;;  %884 = vtanh.f32 %v472_v61 }
  0xef   :  { %v1306_v10 = vadd.f32 %v1253_v5, %v312_v7  ;;  %567 = vrot.lane.b32.xlu1 %v514_v1, %s897_s3  ;;  %v769_v6 = vpop.f32.mrb[9].mxu0  ;;  %v808_v12 = vpop.f32.mrb[9].mxu1  ;;  %v1311_v13 = vadd.f32 %v1253_v5, %v247_v4  ;;  %v484_v7 = vadd.f32 %v1242_v59, %v455_v43  ;;  %886 = vtanh.f32 %v471_v62 }
  0xf0   :  { %v458_v1 = vpop.xlane.xlu0 %457  ;;  %v877_v2 = vpop.eup %876  ;;  %v473_v6 = vadd.f32 %v1242_v59, %v1237_v57 }
  0xf1   :  { %v528_v16 = vmul.f32 %v861_v3, %v1306_v10  ;;  %v515_v31 = vmul.f32 %v865_v21, %v1311_v13  ;;  %888 = vtanh.f32 %v484_v7 }
  0xf2   :  { %v252_v19 = vpop.f32.mrb[10].mxu0  ;;  %v317_v20 = vpop.f32.mrb[10].mxu1  ;;  %890 = vtanh.f32 %v473_v6 }
  0xf3   :  { %v1315_v22 = vadd.f32 %v1253_v5, %v252_v19  ;;  %595 = vrot.lane.b32.xlu0 %v528_v16, %s897_s3  ;;  %593 = vrot.lane.b32.xlu1 %v527_v9, %s897_s3  ;;  %v772_v23 = vpop.f32.mrb[11].mxu0  ;;  %v1320_v24 = vadd.f32 %v1253_v5, %v317_v20  ;;  %v811_v25 = vpop.f32.mrb[11].mxu1  ;;  %v485_v19 = vadd.f32 %v1242_v59, %v458_v1 }
  0xf4   :  { %v879_v16 = vpop.eup %878 }
  0xf5   :  { %v516_v32 = vmul.f32 %v863_v18, %v1315_v22  ;;  %v529_v37 = vmul.f32 %v867_v28, %v1320_v24  ;;  %v881_v20 = vpop.eup %880  ;;  %892 = vtanh.f32 %v485_v19 }
  0xf6   :  { %v257_v34 = vpop.f32.mrb[12].mxu0  ;;  %v322_v35 = vpop.f32.mrb[12].mxu1 }
  0xf7   :  { %v1331_v38 = vadd.f32 %v1253_v5, %v322_v35  ;;  %569 = vrot.lane.b32.xlu1 %v515_v31, %s897_s3  ;;  %571 = vrot.lane.b32.xlu0 %v516_v32, %s897_s3  ;;  %v775_v54 = vpop.f32.mrb[13].mxu0  ;;  %v814_v53 = vpop.f32.mrb[13].mxu1  ;;  %v1336_v39 = vadd.f32 %v1253_v5, %v257_v34 }
  0xf8   :  { %v883_v28 = vpop.eup %882 }
  0xf9   :  { %v530_v42 = vmul.f32 %v869_v33, %v1331_v38  ;;  %v517_v63 = vmul.f32 %v873_v47, %v1336_v39  ;;  %v885_v36 = vpop.eup %884 }
  0xfa   :  { %v262_v45 = vpop.f32.mrb[14].mxu0  ;;  %v327_v46 = vpop.f32.mrb[14].mxu1 }
  0xfb   :  { %v1340_v11 = vadd.f32 %v1253_v5, %v262_v45  ;;  %597 = vrot.lane.b32.xlu1 %v529_v37, %s897_s3  ;;  %599 = vrot.lane.b32.xlu0 %v530_v42, %s897_s3  ;;  %v778_v48 = vpop.f32.mrb[15].mxu0  ;;  %v1345_v49 = vadd.f32 %v1253_v5, %v327_v46  ;;  %v817_v50 = vpop.f32.mrb[15].mxu1 }
  0xfc   :  { %v887_v53 = vpop.eup %886 }
  0xfd   :  { %v518_v0 = vmul.f32 %v871_v44, %v1340_v11  ;;  %v531_v8 = vmul.f32 %v875_v58, %v1345_v49  ;;  %v889_v46 = vpop.eup %888 }
  0xfe   :  { %v267_v3 = vpop.f32.mrb[16].mxu0  ;;  %v332_v4 = vpop.f32.mrb[16].mxu1 }
  0xff   :  { %v1356_v9 = vadd.f32 %v1253_v5, %v332_v4  ;;  %573 = vrot.lane.b32.xlu1 %v517_v63, %s897_s3  ;;  %575 = vrot.lane.b32.xlu0 %v518_v0, %s897_s3  ;;  %v781_v55 = vpop.f32.mrb[17].mxu0  ;;  %v820_v56 = vpop.f32.mrb[17].mxu1  ;;  %v1363_v12 = vadd.f32 %v1253_v5, %v267_v3 }
 0x100   :  { %v891_v58 = vpop.eup %890 }
 0x101   :  { %v532_v52 = vmul.f32 %v877_v2, %v1356_v9  ;;  %v519_v29 = vmul.f32 %v881_v20, %v1363_v12  ;;  %v893_v1 = vpop.eup %892 }
 0x102   :  { %v272_v17 = vpop.f32.mrb[18].mxu0  ;;  %v337_v18 = vpop.f32.mrb[18].mxu1 }
 0x103   :  { %v1368_v21 = vadd.f32 %v1253_v5, %v272_v17  ;;  %601 = vrot.lane.b32.xlu1 %v531_v8, %s897_s3  ;;  %603 = vrot.lane.b32.xlu0 %v532_v52, %s897_s3  ;;  %v784_v57 = vpop.f32.mrb[19].mxu0  ;;  %v1373_v23 = vadd.f32 %v1253_v5, %v337_v18  ;;  %v823_v25 = vpop.f32.mrb[19].mxu1 }
 0x105   :  { %v520_v30 = vmul.f32 %v879_v16, %v1368_v21  ;;  %v533_v32 = vmul.f32 %v883_v28, %v1373_v23 }
 0x106   :  { %v277_v59 = vpop.f32.mrb[20].mxu0  ;;  %v342_v31 = vpop.f32.mrb[20].mxu1 }
 0x107   :  { %577 = vrot.lane.b32.xlu1 %v519_v29, %s897_s3  ;;  %579 = vrot.lane.b32.xlu0 %v520_v30, %s897_s3  ;;  %v787_v33 = vpop.f32.mrb[21].mxu0  ;;  %v826_v34 = vpop.f32.mrb[21].mxu1  ;;  %v1381_v35 = vadd.f32 %v1253_v5, %v277_v59  ;;  %v1388_v44 = vadd.f32 %v1253_v5, %v342_v31 }
 0x109   :  { %v521_v47 = vmul.f32 %v887_v53, %v1381_v35  ;;  %v534_v61 = vmul.f32 %v889_v46, %v1388_v44 }
 0x10a   :  { %v282_v37 = vpop.f32.mrb[22].mxu0  ;;  %v347_v54 = vpop.f32.mrb[22].mxu1 }
 0x10b   :  { %v1384_v42 = vadd.f32 %v1253_v5, %v282_v37  ;;  %605 = vrot.lane.b32.xlu1 %v533_v32, %s897_s3  ;;  %v790_v43 = vpop.f32.mrb[23].mxu0  ;;  %v829_v45 = vpop.f32.mrb[23].mxu1  ;;  %v1399_v0 = vadd.f32 %v1253_v5, %v347_v54 }
 0x10d   :  { %v522_v48 = vmul.f32 %v885_v36, %v1384_v42  ;;  %v535_v3 = vmul.f32 %v893_v1, %v1399_v0 }
 0x10e   :  { %v287_v50 = vpop.f32.mrb[24].mxu0 }
 0x10f   :  { %v1394_v62 = vadd.f32 %v1253_v5, %v287_v50  ;;  %581 = vrot.lane.b32.xlu1 %v521_v47, %s897_s3  ;;  %583 = vrot.lane.b32.xlu0 %v522_v48, %s897_s3  ;;  %v793_v63 = vpop.f32.mrb[25].mxu0 }
 0x111   :  { %v523_v2 = vmul.f32 %v891_v58, %v1394_v62 }
 0x113   :  { %607 = vrot.lane.b32.xlu0 %v534_v61, %s897_s3  ;;  %585 = vrot.lane.b32.xlu1 %v523_v2, %s897_s3 }
 0x117   :  { %609 = vrot.lane.b32.xlu1 %v535_v3, %s897_s3 }
 0x155   :  { %v588_v4 = vpop.permute.xlu0 %587  ;;  %v562_v7 = vpop.permute.xlu1 %561 }
 0x156   :  { %v649_v8 = vadd.f32 %v588_v4, %v1261_v15  ;;  %v636_v55 = vadd.f32 %v562_v7, %v1258_v14 }
 0x158   :  { %675 = vst.msk [vmem:[%s1537_s6 + $0x68] sm:$0xff] %vm661_vm3, %v649_v8  ;;  %662 = vst.msk [vmem:[%s1537_s6] sm:$0xff] %vm661_vm3, %v636_v55 }
 0x159   :  { %v590_v5 = vpop.permute.xlu1 %589  ;;  %v564_v56 = vpop.permute.xlu0 %563 }
 0x15a   :  { %v650_v6 = vadd.f32 %v590_v5, %v1270_v27  ;;  %v637_v52 = vadd.f32 %v564_v56, %v1267_v26 }
 0x15c   :  { %676 = vst.msk [vmem:[%s1537_s6 + $0x70] sm:$0xff] %vm661_vm3, %v650_v6  ;;  %663 = vst.msk [vmem:[%s1537_s6 + $0x8] sm:$0xff] %vm661_vm3, %v637_v52 }
 0x15d   :  { %v592_v14 = vpop.permute.xlu0 %591  ;;  %v566_v15 = vpop.permute.xlu1 %565 }
 0x15e   :  { %v651_v16 = vadd.f32 %v592_v14, %v1283_v41  ;;  %v638_v17 = vadd.f32 %v566_v15, %v1280_v40 }
 0x160   :  { %677 = vst.msk [vmem:[%s1537_s6 + $0x78] sm:$0xff] %vm661_vm3, %v651_v16  ;;  %664 = vst.msk [vmem:[%s1537_s6 + $0x10] sm:$0xff] %vm661_vm3, %v638_v17 }
 0x161   :  { %v568_v26 = vpop.permute.xlu1 %567 }
 0x162   :  { %v639_v27 = vadd.f32 %v568_v26, %v1291_v51 }
 0x164   :  { %665 = vst.msk [vmem:[%s1537_s6 + $0x18] sm:$0xff] %vm661_vm3, %v639_v27 }
 0x165   :  { %v596_v41 = vpop.permute.xlu0 %595  ;;  %v594_v40 = vpop.permute.xlu1 %593 }
 0x166   :  { %v653_v18 = vadd.f32 %v596_v41, %v1306_v10  ;;  %v652_v19 = vadd.f32 %v594_v40, %v1296_v60 }
 0x168   :  { %679 = vst.msk [vmem:[%s1537_s6 + $0x88] sm:$0xff] %vm661_vm3, %v653_v18  ;;  %678 = vst.msk [vmem:[%s1537_s6 + $0x80] sm:$0xff] %vm661_vm3, %v652_v19 }
 0x169   :  { %v570_v51 = vpop.permute.xlu1 %569  ;;  %v572_v20 = vpop.permute.xlu0 %571 }
 0x16a   :  { %v640_v57 = vadd.f32 %v570_v51, %v1311_v13  ;;  %v641_v25 = vadd.f32 %v572_v20, %v1315_v22 }
 0x16c   :  { %666 = vst.msk [vmem:[%s1537_s6 + $0x20] sm:$0xff] %vm661_vm3, %v640_v57  ;;  %667 = vst.msk [vmem:[%s1537_s6 + $0x28] sm:$0xff] %vm661_vm3, %v641_v25 }
 0x16d   :  { %v598_v60 = vpop.permute.xlu1 %597  ;;  %v600_v10 = vpop.permute.xlu0 %599 }
 0x16e   :  { %v654_v28 = vadd.f32 %v598_v60, %v1320_v24  ;;  %v655_v29 = vadd.f32 %v600_v10, %v1331_v38 }
 0x170   :  { %680 = vst.msk [vmem:[%s1537_s6 + $0x90] sm:$0xff] %vm661_vm3, %v654_v28  ;;  %681 = vst.msk [vmem:[%s1537_s6 + $0x98] sm:$0xff] %vm661_vm3, %v655_v29 }
 0x171   :  { %v574_v13 = vpop.permute.xlu1 %573  ;;  %v576_v22 = vpop.permute.xlu0 %575 }
 0x172   :  { %v642_v30 = vadd.f32 %v574_v13, %v1336_v39  ;;  %v643_v59 = vadd.f32 %v576_v22, %v1340_v11 }
 0x174   :  { %668 = vst.msk [vmem:[%s1537_s6 + $0x30] sm:$0xff] %vm661_vm3, %v642_v30  ;;  %669 = vst.msk [vmem:[%s1537_s6 + $0x38] sm:$0xff] %vm661_vm3, %v643_v59 }
 0x175   :  { %v602_v24 = vpop.permute.xlu1 %601  ;;  %v604_v38 = vpop.permute.xlu0 %603 }
 0x176   :  { %v656_v31 = vadd.f32 %v602_v24, %v1345_v49  ;;  %v657_v32 = vadd.f32 %v604_v38, %v1356_v9 }
 0x178   :  { %682 = vst.msk [vmem:[%s1537_s6 + $0xa0] sm:$0xff] %vm661_vm3, %v656_v31  ;;  %683 = vst.msk [vmem:[%s1537_s6 + $0xa8] sm:$0xff] %vm661_vm3, %v657_v32 }
 0x179   :  { %v578_v39 = vpop.permute.xlu1 %577  ;;  %v580_v11 = vpop.permute.xlu0 %579 }
 0x17a   :  { %v644_v33 = vadd.f32 %v578_v39, %v1363_v12  ;;  %v645_v34 = vadd.f32 %v580_v11, %v1368_v21 }
 0x17c   :  { %670 = vst.msk [vmem:[%s1537_s6 + $0x40] sm:$0xff] %vm661_vm3, %v644_v33  ;;  %671 = vst.msk [vmem:[%s1537_s6 + $0x48] sm:$0xff] %vm661_vm3, %v645_v34 }
 0x17d   :  { %v606_v49 = vpop.permute.xlu1 %605 }
 0x17e   :  { %v658_v9 = vadd.f32 %v606_v49, %v1373_v23 }
 0x180   :  { %684 = vst.msk [vmem:[%s1537_s6 + $0xb0] sm:$0xff] %vm661_vm3, %v658_v9 }
 0x181   :  { %v582_v12 = vpop.permute.xlu1 %581  ;;  %v584_v21 = vpop.permute.xlu0 %583 }
 0x182   :  { %v646_v36 = vadd.f32 %v582_v12, %v1381_v35  ;;  %v647_v37 = vadd.f32 %v584_v21, %v1384_v42 }
 0x184   :  { %672 = vst.msk [vmem:[%s1537_s6 + $0x50] sm:$0xff] %vm661_vm3, %v646_v36  ;;  %673 = vst.msk [vmem:[%s1537_s6 + $0x58] sm:$0xff] %vm661_vm3, %v647_v37 }
 0x185   :  { %v608_v23 = vpop.permute.xlu0 %607  ;;  %v586_v54 = vpop.permute.xlu1 %585 }
 0x186   :  { %v659_v53 = vadd.f32 %v608_v23, %v1388_v44  ;;  %v648_v43 = vadd.f32 %v586_v54, %v1394_v62 }
 0x188   :  { %685 = vst.msk [vmem:[%s1537_s6 + $0xb8] sm:$0xff] %vm661_vm3, %v659_v53  ;;  %674 = vst.msk [vmem:[%s1537_s6 + $0x60] sm:$0xff] %vm661_vm3, %v648_v43 }
 0x189   :  { %v610_v35 = vpop.permute.xlu1 %609 }
 0x18a   :  { %v660_v42 = vadd.f32 %v610_v35, %v1399_v0 }
 0x18c   :  { %686 = vst.msk [vmem:[%s1537_s6 + $0xc0] sm:$0xff] %vm661_vm3, %v660_v42 }

</bundles_post_ra>
